<compile_context>
chip_gen: v5e
topology: v5e:2x2
jax: 0.10.0
libtpu: 0.0.40
codegen_flags: <defaults>
</compile_context>

<pallas_src>
import functools

import jax
import jax.numpy as jnp
from jax.experimental import pallas as pl
from jax.experimental.pallas import tpu as pltpu


LANE = 128                              # pad feature dims to the lane width
X_RESIDENT_BUDGET = 16 * 1024 * 1024    # VMEM bytes allowed for the resident X


def _round_up(x, m):
    return (x + m - 1) // m * m


def _choose_tiles(n):
    """Largest A tile in {512, 256} that still leaves >=2 row blocks (so v7x
    megacore keeps both TensorCores busy); 128 floor for tiny graphs."""
    for t in (512, 256):
        if _round_up(n, t) // t >= 2:
            return t, t
    return 128, 128


# -----------------------------------------------------------------------------
# Fused GCN layer kernel:  out = silu( (dinv * (A01 @ Xs)) @ W + b )
#   A01 : 0/1 int8 adjacency with self loops, streamed as (tm, tk) tiles
#   Xs  : D^{-1/2}-pre-scaled features (bf16), VMEM-resident (or streamed per k)
#   W,b : f32, VMEM-resident
#   dinv: (n_pad, 1) f32 column, per-row-block tile
# -----------------------------------------------------------------------------
def gcn_layer_kernel(a_ref, x_ref, w_ref, b_ref, dinv_ref, out_ref, acc_ref,
                     *, tk, x_resident, prescale_out):
    k = pl.program_id(1)

    a = a_ref[...].astype(jnp.bfloat16)          # exact 0/1 dequant (VPU)
    if x_resident:
        off = pl.multiple_of(k * tk, tk)
        xk = x_ref[pl.ds(off, tk), :]            # slice resident X; no extra DMA
    else:
        xk = x_ref[...]

    part = jnp.dot(a, xk, preferred_element_type=jnp.float32)

    @pl.when(k == 0)
    def _():
        acc_ref[...] = part                      # write directly, no zero-init

    @pl.when(k > 0)
    def _():
        acc_ref[...] = acc_ref[...] + part

    @pl.when(k == pl.num_programs(1) - 1)
    def _():
        dinv = dinv_ref[...]                     # (tm, 1) f32
        ax = acc_ref[...] * dinv                 # D^{-1/2} post-scale, f32
        h = jnp.dot(ax, w_ref[...], preferred_element_type=jnp.float32) + b_ref[...]
        h = h * jax.nn.sigmoid(h)                # SiLU in f32
        if prescale_out:
            h = h * dinv                         # fuse next layer's D^{-1/2} pre-scale
        out_ref[...] = h.astype(out_ref.dtype)


# -----------------------------------------------------------------------------
# One fused GCN layer (padded operands).
# -----------------------------------------------------------------------------
def _gcn_layer(a_pad, x_pad, w_pad, b_pad, dinv_col, *, out_dtype, prescale_out,
               tm, tk):
    n_pad = a_pad.shape[0]
    f_in = x_pad.shape[1]
    f_out = w_pad.shape[1]

    x_bytes = n_pad * f_in * x_pad.dtype.itemsize
    x_resident = x_bytes <= X_RESIDENT_BUDGET
    if x_resident:
        # Constant index_map -> DMA'd into VMEM once, stays resident.
        x_spec = pl.BlockSpec((n_pad, f_in), lambda i, k: (0, 0))
    else:
        # Fallback for very large graphs: stream the k-th row block.
        x_spec = pl.BlockSpec((tk, f_in), lambda i, k: (k, 0))

    out_itemsize = jnp.dtype(out_dtype).itemsize
    # Explicit VMEM budget (double-buffered A/out tiles, possibly double-
    # buffered resident X, f32 acc, resident W/b/dinv) so v7x's 64 MiB physical
    # scratchpad is never exceeded.
    est_vmem = (2 * tm * tk * a_pad.dtype.itemsize
                + 2 * (x_bytes if x_resident else tk * f_in * x_pad.dtype.itemsize)
                + tm * f_in * 4
                + f_in * f_out * 4 + f_out * 4 + 2 * tm * 4
                + 2 * tm * f_out * out_itemsize)
    vmem_limit = int(min(max(2 * est_vmem, 32 * 1024 * 1024), 48 * 1024 * 1024))

    kernel = functools.partial(gcn_layer_kernel, tk=tk,
                               x_resident=x_resident, prescale_out=prescale_out)

    flops = 2 * n_pad * n_pad * f_in + 2 * n_pad * f_in * f_out
    bytes_accessed = (n_pad * n_pad * a_pad.dtype.itemsize
                      + (1 if x_resident else n_pad // tm) * x_bytes
                      + f_in * f_out * 4
                      + n_pad * f_out * out_itemsize)

    return pl.pallas_call(
        kernel,
        out_shape=jax.ShapeDtypeStruct((n_pad, f_out), out_dtype),
        grid_spec=pltpu.PrefetchScalarGridSpec(
            num_scalar_prefetch=0,
            grid=(n_pad // tm, n_pad // tk),
            in_specs=[
                pl.BlockSpec((tm, tk), lambda i, k: (i, k)),       # A01 (int8)
                x_spec,                                            # Xs
                pl.BlockSpec((f_in, f_out), lambda i, k: (0, 0)),  # W (resident)
                pl.BlockSpec((1, f_out), lambda i, k: (0, 0)),     # bias
                pl.BlockSpec((tm, 1), lambda i, k: (i, 0)),        # dinv rows
            ],
            out_specs=pl.BlockSpec((tm, f_out), lambda i, k: (i, 0)),
            scratch_shapes=[pltpu.VMEM((tm, f_in), jnp.float32)],  # f32 A@X acc
        ),
        compiler_params=pltpu.CompilerParams(
            dimension_semantics=("parallel", "arbitrary"),
            vmem_limit_bytes=vmem_limit,
        ),
        cost_estimate=pl.CostEstimate(
            flops=flops,
            transcendentals=n_pad * f_out,
            bytes_accessed=bytes_accessed,
        ),
    )(a_pad, x_pad, w_pad, b_pad, dinv_col)


# -----------------------------------------------------------------------------
# Glue: dense 0/1 adjacency (A + I) and D^{-1/2} from a (2, E) edge_index.
# NOTE: duplicate edges are deduplicated (simple-graph assumption); PyG GCNConv
#       scatter-adds parallel edges / edge_weight, which is not supported here.
# -----------------------------------------------------------------------------
def build_adjacency_and_dinv(edge_index, num_nodes):
    src, dst = edge_index[0], edge_index[1]
    a = jnp.zeros((num_nodes, num_nodes), jnp.float32)
    a = a.at[dst, src].set(1.0)                 # message flows src -> dst
    diag = jnp.arange(num_nodes)
    a = a.at[diag, diag].set(1.0)               # self loops
    deg = jnp.sum(a, axis=1)
    dinv = jnp.where(deg > 0, 1.0 / jnp.sqrt(deg), 0.0)
    return a, dinv


def build_normalized_adjacency(edge_index, num_nodes):
    a, dinv = build_adjacency_and_dinv(edge_index, num_nodes)
    return dinv[:, None] * a * dinv[None, :]


# -----------------------------------------------------------------------------
# Full decoder forward (Pallas-backed). Returns (features, edge_index).
# -----------------------------------------------------------------------------
def variational_gcn_decoder(x, edge_index, params):
    n, f_in = x.shape
    w1, b1, w2, b2 = params["w1"], params["b1"], params["w2"], params["b2"]
    hidden = w1.shape[1]
    out_dim = w2.shape[1]

    tm, tk = _choose_tiles(n)
    n_pad = _round_up(n, max(tm, tk))
    f_in_pad = _round_up(f_in, LANE)
    hid_pad = _round_up(hidden, LANE)
    out_pad = _round_up(out_dim, LANE)

    # 0/1 adjacency (int8, exact) + f32 D^{-1/2}; normalization never touches bf16.
    a01, dinv = build_adjacency_and_dinv(edge_index, n)
    a_pad = jnp.pad(a01, ((0, n_pad - n), (0, n_pad - n))).astype(jnp.int8)
    dinv_col = jnp.pad(dinv, (0, n_pad - n)).reshape(n_pad, 1).astype(jnp.float32)

    # Pre-scale input features by D^{-1/2} in f32, then lane-pad and cast bf16.
    x_scaled = dinv[:, None] * x
    x_pad = jnp.pad(x_scaled, ((0, n_pad - n), (0, f_in_pad - f_in))).astype(jnp.bfloat16)

    w1_pad = jnp.pad(w1, ((0, f_in_pad - f_in), (0, hid_pad - hidden))).astype(jnp.float32)
    w2_pad = jnp.pad(w2, ((0, hid_pad - hidden), (0, out_pad - out_dim))).astype(jnp.float32)
    b1_pad = jnp.pad(b1.reshape(1, -1), ((0, 0), (0, hid_pad - hidden))).astype(jnp.float32)
    b2_pad = jnp.pad(b2.reshape(1, -1), ((0, 0), (0, out_pad - out_dim))).astype(jnp.float32)

    # Layer 1: conv1 + SiLU; output already pre-scaled by D^{-1/2} for layer 2
    # and stored bf16 to halve the intermediate's HBM traffic.
    h1 = _gcn_layer(a_pad, x_pad, w1_pad, b1_pad, dinv_col,
                    out_dtype=jnp.bfloat16, prescale_out=True, tm=tm, tk=tk)
    # Layer 2: conv2 + SiLU, plain f32 output.
    h2 = _gcn_layer(a_pad, h1, w2_pad, b2_pad, dinv_col,
                    out_dtype=jnp.float32, prescale_out=False, tm=tm, tk=tk)

    return h2[:n, :out_dim], edge_index


# -----------------------------------------------------------------------------
# Param init matching GCNConv shapes: W:(in, out), b:(out,) (bias zeros).
# -----------------------------------------------------------------------------
def init_params(key, in_channels, out_channels):
    k1, k2 = jax.random.split(key)
    hidden = 2 * out_channels
    w1 = jax.random.normal(k1, (in_channels, hidden), jnp.float32) * 0.1
    w2 = jax.random.normal(k2, (hidden, out_channels), jnp.float32) * 0.1
    b1 = jnp.zeros((hidden,), jnp.float32)
    b2 = jnp.zeros((out_channels,), jnp.float32)
    return {"w1": w1, "b1": b1, "w2": w2, "b2": b2}


def reference_forward(x, edge_index, params):
    """Pure-JAX f32 reference of the same math."""
    a = build_normalized_adjacency(edge_index, x.shape[0])
    h = a @ (x @ params["w1"]) + params["b1"]
    h = h * jax.nn.sigmoid(h)
    h = a @ (h @ params["w2"]) + params["b2"]
    h = h * jax.nn.sigmoid(h)
    return h


if __name__ == "__main__":
    key = jax.random.PRNGKey(0)
    k_x, k_e, k_p = jax.random.split(key, 3)

    num_nodes = 200        # not a multiple of 128 -> exercises the padding path
    in_channels = 16
    out_channels = 8
    num_edges = 512

    x = jax.random.normal(k_x, (num_nodes, in_channels), jnp.float32)
    edge_index = jax.random.randint(k_e, (2, num_edges), 0, num_nodes, jnp.int32)
    params = init_params(k_p, in_channels, out_channels)

    out, ei = variational_gcn_decoder(x, edge_index, params)
    out = jax.block_until_ready(out)

    ref = reference_forward(x, edge_index, params)
    assert out.shape == (num_nodes, out_channels)
    err = float(jnp.max(jnp.abs(out - ref)))
    assert jnp.allclose(out, ref, atol=2e-2, rtol=2e-2), f"max abs err {err}"
    assert jnp.array_equal(ei, edge_index)

    print("KERNEL_OK")
</pallas_src>

<mosaic_0001>
module attributes {stable_mosaic.version = 11 : i64} {
  func.func @gcn_layer_kernel(%arg0: i32, %arg1: i32, %arg2: memref<128x128xi8, #tpu.memory_space<vmem>>, %arg3: memref<256x128xbf16, #tpu.memory_space<vmem>>, %arg4: memref<128x128xf32, #tpu.memory_space<vmem>>, %arg5: memref<1x128xf32, #tpu.memory_space<vmem>>, %arg6: memref<128x1xf32, #tpu.memory_space<vmem>>, %arg7: memref<128x128xbf16, #tpu.memory_space<vmem>>, %arg8: memref<128x128xf32, #tpu.memory_space<vmem>>) attributes {dimension_semantics = [#tpu.dimension_semantics<parallel>, #tpu.dimension_semantics<arbitrary>], iteration_bounds = array<i64: 2, 2>, scalar_prefetch = 0 : i64, scratch_operands = 1 : i64, tpu.core_type = #tpu.core_type<tc>, window_params = [{transform_indices = @transform_0, window_bounds = array<i64: 128, 128>}, {pipeline_mode = #tpu.pipeline_mode<synchronous>, transform_indices = @transform_1, window_bounds = array<i64: 256, 128>}, {pipeline_mode = #tpu.pipeline_mode<synchronous>, transform_indices = @transform_2, window_bounds = array<i64: 128, 128>}, {pipeline_mode = #tpu.pipeline_mode<synchronous>, transform_indices = @transform_3, window_bounds = array<i64: 1, 128>}, {transform_indices = @transform_4, window_bounds = array<i64: 128, 1>}, {transform_indices = @transform_5, window_bounds = array<i64: 128, 128>}]} {
    %c0 = arith.constant 0 : index
    %c0_0 = arith.constant 0 : index
    %0 = vector.load %arg2[%c0, %c0_0] : memref<128x128xi8, #tpu.memory_space<vmem>>, vector<128x128xi8>
    %1 = arith.sitofp %0 : vector<128x128xi8> to vector<128x128xbf16>
    %c128_i32 = arith.constant 128 : i32
    %2 = arith.muli %arg1, %c128_i32 : i32
    %3 = tpu.assume_multiple %2, 128 : i32
    %4 = arith.index_cast %3 : i32 to index
    %c0_1 = arith.constant 0 : index
    %5 = vector.load %arg3[%4, %c0_1] : memref<256x128xbf16, #tpu.memory_space<vmem>>, vector<128x128xbf16>
    %cst = arith.constant dense<0.000000e+00> : vector<128x128xf32>
    %6 = tpu.matmul %1, %5, %cst {dimension_numbers = #tpu.dot_dimension_numbers<[1], [0], [0], [1], [0, 0, 1, 1], [], []>} : vector<128x128xbf16>, vector<128x128xbf16>, vector<128x128xf32> -> vector<128x128xf32>
    %c0_i32 = arith.constant 0 : i32
    %7 = arith.cmpi eq, %arg1, %c0_i32 : i32
    %8 = arith.extui %7 : i1 to i32
    %c0_i32_2 = arith.constant 0 : i32
    %9 = arith.cmpi ne, %8, %c0_i32_2 : i32
    scf.if %9 {
      %c0_6 = arith.constant 0 : index
      %c0_7 = arith.constant 0 : index
      %16 = vector.load %arg8[%c0_6, %c0_7] : memref<128x128xf32, #tpu.memory_space<vmem>>, vector<128x128xf32>
      tpu.vector_store %arg8[%c0_6, %c0_7], %6 {strides = array<i32>} : memref<128x128xf32, #tpu.memory_space<vmem>>, vector<128x128xf32>,
    } else {
    }
    %c0_i32_3 = arith.constant 0 : i32
    %10 = arith.cmpi sgt, %arg1, %c0_i32_3 : i32
    %11 = arith.extui %10 : i1 to i32
    %c0_i32_4 = arith.constant 0 : i32
    %12 = arith.cmpi ne, %11, %c0_i32_4 : i32
    scf.if %12 {
      %c0_6 = arith.constant 0 : index
      %c0_7 = arith.constant 0 : index
      %16 = vector.load %arg8[%c0_6, %c0_7] : memref<128x128xf32, #tpu.memory_space<vmem>>, vector<128x128xf32>
      %17 = arith.addf %16, %6 : vector<128x128xf32>
      %c0_8 = arith.constant 0 : index
      %c0_9 = arith.constant 0 : index
      %18 = vector.load %arg8[%c0_8, %c0_9] : memref<128x128xf32, #tpu.memory_space<vmem>>, vector<128x128xf32>
      tpu.vector_store %arg8[%c0_8, %c0_9], %17 {strides = array<i32>} : memref<128x128xf32, #tpu.memory_space<vmem>>, vector<128x128xf32>,
    } else {
    }
    %c1_i32 = arith.constant 1 : i32
    %13 = arith.cmpi eq, %arg1, %c1_i32 : i32
    %14 = arith.extui %13 : i1 to i32
    %c0_i32_5 = arith.constant 0 : i32
    %15 = arith.cmpi ne, %14, %c0_i32_5 : i32
    scf.if %15 {
      %c0_6 = arith.constant 0 : index
      %c0_7 = arith.constant 0 : index
      %16 = vector.load %arg6[%c0_6, %c0_7] : memref<128x1xf32, #tpu.memory_space<vmem>>, vector<128x1xf32>
      %c0_8 = arith.constant 0 : index
      %c0_9 = arith.constant 0 : index
      %17 = vector.load %arg8[%c0_8, %c0_9] : memref<128x128xf32, #tpu.memory_space<vmem>>, vector<128x128xf32>
      %18 = vector.broadcast %16 : vector<128x1xf32> to vector<128x128xf32>
      %19 = arith.mulf %17, %18 : vector<128x128xf32>
      %c0_10 = arith.constant 0 : index
      %c0_11 = arith.constant 0 : index
      %20 = vector.load %arg4[%c0_10, %c0_11] : memref<128x128xf32, #tpu.memory_space<vmem>>, vector<128x128xf32>
      %cst_12 = arith.constant dense<0.000000e+00> : vector<128x128xf32>
      %21 = tpu.matmul %19, %20, %cst_12 {dimension_numbers = #tpu.dot_dimension_numbers<[1], [0], [0], [1], [0, 0, 1, 1], [], []>} : vector<128x128xf32>, vector<128x128xf32>, vector<128x128xf32> -> vector<128x128xf32>
      %c0_13 = arith.constant 0 : index
      %c0_14 = arith.constant 0 : index
      %22 = vector.load %arg5[%c0_13, %c0_14] : memref<1x128xf32, #tpu.memory_space<vmem>>, vector<1x128xf32>
      %23 = vector.broadcast %22 : vector<1x128xf32> to vector<128x128xf32>
      %24 = arith.addf %21, %23 : vector<128x128xf32>
      %25 = arith.negf %24 : vector<128x128xf32>
      %26 = math.exp %25 : vector<128x128xf32>
      %cst_15 = arith.constant 1.000000e+00 : f32
      %27 = vector.broadcast %cst_15 : f32 to vector<128x128xf32>
      %28 = arith.addf %27, %26 : vector<128x128xf32>
      %29 = arith.divf %27, %28 : vector<128x128xf32>
      %30 = arith.mulf %24, %29 : vector<128x128xf32>
      %31 = vector.broadcast %16 : vector<128x1xf32> to vector<128x128xf32>
      %32 = arith.mulf %30, %31 : vector<128x128xf32>
      %33 = arith.truncf %32 : vector<128x128xf32> to vector<128x128xbf16>
      %c0_16 = arith.constant 0 : index
      %c0_17 = arith.constant 0 : index
      %34 = vector.load %arg7[%c0_16, %c0_17] : memref<128x128xbf16, #tpu.memory_space<vmem>>, vector<128x128xbf16>
      tpu.vector_store %arg7[%c0_16, %c0_17], %33 {strides = array<i32>} : memref<128x128xbf16, #tpu.memory_space<vmem>>, vector<128x128xbf16>,
    } else {
    }
    return
  }
  func.func @transform_0(%arg0: i32, %arg1: i32) -> (i32, i32) {
    %c0_i32 = arith.constant 0 : i32
    return %arg0, %arg1 : i32, i32
  }
  func.func @transform_1(%arg0: i32, %arg1: i32) -> (i32, i32) {
    %c0_i32 = arith.constant 0 : i32
    %c0_i32_0 = arith.constant 0 : i32
    %c0_i32_1 = arith.constant 0 : i32
    return %c0_i32, %c0_i32_0 : i32, i32
  }
  func.func @transform_2(%arg0: i32, %arg1: i32) -> (i32, i32) {
    %c0_i32 = arith.constant 0 : i32
    %c0_i32_0 = arith.constant 0 : i32
    %c0_i32_1 = arith.constant 0 : i32
    return %c0_i32, %c0_i32_0 : i32, i32
  }
  func.func @transform_3(%arg0: i32, %arg1: i32) -> (i32, i32) {
    %c0_i32 = arith.constant 0 : i32
    %c0_i32_0 = arith.constant 0 : i32
    %c0_i32_1 = arith.constant 0 : i32
    return %c0_i32, %c0_i32_0 : i32, i32
  }
  func.func @transform_4(%arg0: i32, %arg1: i32) -> (i32, i32) {
    %c0_i32 = arith.constant 0 : i32
    %c0_i32_0 = arith.constant 0 : i32
    return %arg0, %c0_i32 : i32, i32
  }
  func.func @transform_5(%arg0: i32, %arg1: i32) -> (i32, i32) {
    %c0_i32 = arith.constant 0 : i32
    %c0_i32_0 = arith.constant 0 : i32
    return %arg0, %c0_i32 : i32, i32
  }
}

</mosaic_0001>

<bundles_post_ra>
// kernel: tpu_custom_call.1
= control target key start
LH: loop header
LB: loop body
LE: loop exit
PB: predicated region body
PF: predicated region fallthrough
CT: control target
= control target key end

     0   :  { %s2525_s0 = inlined_call_operand.vmem [shape: s8[256,256], index: 0, kind: input, shape index: {}]   ;;  %s2526_s1 = inlined_call_operand.vmem [shape: bf16[256,128], index: 1, kind: input, shape index: {}]   ;;  %s2527_s2 = inlined_call_operand.hbm [shape: f32[128,128], index: 2, kind: input, shape index: {}]   ;;  %s2528_s3 = inlined_call_operand.vmem [shape: f32[1,128], index: 3, kind: input, shape index: {}]   ;;  %s2529_s4 = inlined_call_operand.vmem [shape: f32[256,1], index: 4, kind: input, shape index: {}]   ;;  %s2530_s5 = inlined_call_operand.hbm [shape: bf16[256,128], index: 5, kind: output, shape index: {}]  }
   0x1   :  { %2534 = sst [smem:[#allocation15_spill]] %s2527_s2 }
   0x2   :  { %10 = vsyncpa [#allocation5], 0 }
   0x3   :  { %11 = vsyncpa [#allocation6], 0 }
   0x4   :  { %13 = vsyncpa [#allocation6 + $0x1], 0  ;;  %s1825_s18 = smov 0   ;;  %s1827_s19 = smov 0  }
   0x5   :  { %s1829_s20 = smov 0   ;;  %s1831_s21 = smov 0  }
   0x6   :  { %s1833_s22 = smov 0   ;;  %s1835_s23 = smov 0  }
   0x7   :  { %s1837_s24 = smov 0   ;;  %s1839_s25 = smov 0  }
   0x8   :  { %s1841_s26 = smov 0   ;;  %s1843_s27 = smov 0  }
   0x9 LB: > { %2535 = sst [smem:[#allocation10_spill]] %s1759_s20  ;;  %s1270_s28 = sadd.s32 4294967295, %s1787_s27   ;;  %s1787_s27 = sphi %s1843_s27, %s19_s27   ;;  %s1783_s26 = sphi %s1841_s26, %s2592_s26   ;;  %s1779_s25 = sphi %s1839_s25, %s2591_s25   ;;  %s1775_s24 = sphi %s1837_s24, %s2590_s24   ;;  %s1771_s23 = sphi %s1835_s23, %s2589_s23   ;;  %s1767_s22 = sphi %s1833_s22, %s2588_s22   ;;  %s1763_s21 = sphi %s1831_s21, %s2587_s21   ;;  %s1759_s20 = sphi %s1829_s20, %s2581_s20   ;;  %s1755_s19 = sphi %s1827_s19, %s2586_s19   ;;  %s1751_s18 = sphi %s1825_s18, %s2585_s18  }
   0xa   : > { %s1271_s29 = sadd.s32 4294967294, %s1787_s27   ;;  %s28_s30 = sadd.s32 1, %s1779_s25 }
   0xb   : > { %s31_s6 = sadd.s32 1, %s1783_s26  ;;  %p29_p0 = scmp.ge.s32.totalorder %s28_s30, 2 }
   0xc   : > { %s40_s7 = sadd.s32 1, %s1767_s22  ;;  %p47_p1 = scmp.ne.s32.totalorder %s1767_s22, %s1763_s21 }
   0xd   : > { %p48_p2 = scmp.eq.s32.totalorder %s1787_s27, 0  ;;  %s2594_s30 = smov (%p29_p0, %s28_s30), 0 }
   0xe   : > { %2536 = sst [smem:[#allocation11_spill]] %s2594_s30  ;;  %s2596_s6 = smov (!%p29_p0, %s31_s6), %s1783_s26 }
   0xf   : > { %s36_s8 = ssub.s32 %s1779_s25, %s2594_s30  ;;  %p1888_p3 = por %p48_p2, %p47_p1 }
  0x10   : > { %p33_p4 = scmp.ge.s32.totalorder %s2596_s6, 2  ;;  %s155_s10 = sadd.s32 1, %s1759_s20 }
  0x11   : > { %p165_p5 = scmp.ne.s32.totalorder %s1759_s20, %s1755_s19  ;;  %p166_p6 = scmp.eq.s32.totalorder %s1270_s28, 3 }
  0x12   : > { %s2598_s6 = smov (%p33_p4, %s2596_s6), 0  ;;  %p171_p8 = scmp.ne.s32.totalorder %s1755_s19, %s1751_s18 }
  0x13   : > { %2538 = sst [smem:[#allocation12_spill]] %s2598_s6  ;;  %p1897_p7 = por %p166_p6, %p165_p5 }
  0x14   : > { %s35_s12 = ssub.s32 %s1783_s26, %s2598_s6  ;;  %p172_p9 = scmp.eq.s32.totalorder %s1271_s29, 3 }
  0x15   : > { %s37_s13 = sor.u32 %s36_s8, %s35_s12  ;;  %p153_p10 = scmp.eq.s32.totalorder %s35_s12, 0 }
  0x16   : > { %p38_p11 = scmp.eq.s32.totalorder %s37_s13, 0  ;;  %p1905_p12 = por %p172_p9, %p171_p8 }
  0x17   : > { %s1910_s15 = scalar_select %p153_p10, %s1759_s20, %s155_s10  }
  0x18   : > { %s1913_s16 = scalar_select %p38_p11, %s1767_s22, %s40_s7  }
  0x19   : > { %2541 = sst [smem:[#allocation13_spill]] %s1910_s15  ;;  %p1272_p13 = scmp.ge.s32.totalorder %s1787_s27, 1 }
  0x1a   : > { %2542 = sst [smem:[#allocation14_spill]] %s1913_s16  ;;  %p179_p0 = scmp.lt.s32.totalorder %s1787_s27, 5 }
  0x1b   : > { %p1917_p1 = scmp.eq.s32.totalorder %s1270_s28, 0  ;;  %s2545_s2 = sld [smem:[#allocation15_spill]] }
  0x1c   : > { %p1921_p2 = pnand %p1272_p13, %p179_p0  ;;  %s1789_s7 = smov [#allocation4]  }
  0x1d   : > { %s195_s10 = sshll.u32 %s1789_s7, 4  ;;  %s1790_s28 = smov 128   ;;  %s196_s10 = int_to_ptr.vmem [resolvable:$true] %s195_s10 }
  0x1e   : > { %p1478_p4 = pneg %p1921_p2  ;;  %s1791_s6 = smov 8  }
  0x1f   : > { %p1274_p6 = scmp.ge.s32.totalorder %s1787_s27, 4 }
  0x20   : > { %p1479_p5 = pnand %p1917_p1, %p1478_p4 }
  0x21   : > { %s193_s13 = sshll.u32 %s2545_s2, 4  ;;  %208 = sbr.rel (%p1274_p6) target bundleno = 48 (0x30), region = 28  ;;  %s194_s13 = int_to_ptr.hbm [resolvable:$true] %s193_s13 }
  0x22   : > { %1481 = dma.hbm_to_vmem [thread:$0]  (!%p1479_p5), %s194_s13, 2048, %s196_s10, [#allocation5], %s1790_s28, %s1790_s28, %s1791_s6  }
  0x26   : > { %211 = sbr.rel (!%p1888_p3) target bundleno = 48 (0x30), region = 32  ;;  %s213_s8 = sand.u32 (%p1888_p3), 1, %s1767_s22  }
  0x27   : > { %s1343_s12 = sshll.u32 (%p1888_p3), %s1783_s26, 3  ;;  %s1275_s2 = sshll.u32 (%p1888_p3), %s213_s8, 5 }
  0x28   : > { %s218_s30 = sadd.s32 (%p1888_p3), %s1779_s25, %s1343_s12  ;;  %s215_s6 = scalar_lea.vmem (%p1888_p3), [#allocation3], %s1275_s2 }
  0x29   : > { %s1278_s7 = sshll.u32 (%p1888_p3), %s218_s30, 3 }
  0x2a   : > { %s220_s20 = scalar_lea.vmem (%p1888_p3), %s2525_s0, %s1278_s7 }
  0x2b   : > { %v255_v0 = vld [vmem:[%s220_s20] sm:$0xff]  ;;  %v257_v1 = vld [vmem:[%s220_s20 + $0x10] sm:$0xff] }
  0x2c   : > { %v259_v2 = vld [vmem:[%s220_s20 + $0x20] sm:$0xff]  ;;  %256 = vst [vmem:[%s215_s6] sm:$0xff] %v255_v0  ;;  %v261_v3 = vld [vmem:[%s220_s20 + $0x30] sm:$0xff] }
  0x2d   : > { %258 = vst [vmem:[%s215_s6 + $0x8] sm:$0xff] %v257_v1 }
  0x2e   : > { %260 = vst [vmem:[%s215_s6 + $0x10] sm:$0xff] %v259_v2 }
  0x2f   : > { %262 = vst [vmem:[%s215_s6 + $0x18] sm:$0xff] %v261_v3 }
  0x30 PF: > { %280 = sbr.rel (%p1921_p2) target bundleno = 658 (0x292), region = 74  ;;  %s283_s30 = sand.u32 (!%p1921_p2), 1, %s1763_s21  }
  0x31   : > { %s1280_s9 = sshll.u32 (!%p1921_p2), %s283_s30, 5 }
  0x32   : > { %s1944_s15 = scalar_lea.vmem (!%p1921_p2), [#allocation3], %s1280_s9 }
  0x35   : > { %1742 = dma.done.wait (%p1917_p1), [#allocation5], 2048  }
  0x36   : > { %1744 = vsyncadd (%p1917_p1), [#allocation5], 4294965248  ;;  %s317_s2 = sand.u32 1, %s1755_s19   ;;  %s1283_s20 = sshll.u32 %s1775_s24, 4  ;;  %v328_v10 = vld [vmem:[%s1944_s15] sm:$0xff]  ;;  %v329_v11 = vld [vmem:[%s1944_s15 + $0x8] sm:$0xff] }
  0x37   : > { %s1954_s16 = sshll.u32 %s317_s2, 6  ;;  %p322_p3 = scmp.lt.s32.totalorder %s1283_s20, 31  ;;  %v330_v12 = vld [vmem:[%s1944_s15 + $0x10] sm:$0xff]  ;;  %v331_v13 = vld [vmem:[%s1944_s15 + $0x18] sm:$0xff]  ;;  %v332_v14 = vunpack.c.0.s8 %v328_v10  ;;  %v333_v15 = vunpack.c.1.s8 %v328_v10  ;;  %v336_v16 = vunpack.c.0.s8 %v329_v11  ;;  %v337_v17 = vunpack.c.1.s8 %v329_v11 }
  0x38   : > { %s1285_s29 = sshll.u32 %s1771_s23, 7  ;;  %v340_v19 = vunpack.c.0.s8 %v330_v12  ;;  %v341_v20 = vunpack.c.1.s8 %v330_v12  ;;  %v344_v21 = vunpack.c.0.s8 %v331_v13  ;;  %v345_v22 = vunpack.c.1.s8 %v331_v13  ;;  %s1988_s30 = scalar_lea.vmem [#allocation7], %s1954_s16 }
  0x39   : > { %s2600_s20 = smov (!%p322_p3, %s1283_s20), 31  ;;  %s373_s21 = sshra.s32 %s1285_s29, 3  ;;  %v348_v23 = vcvt.s32.f32 %v332_v14  ;;  %v349_v24 = vcvt.s32.f32 %v333_v15  ;;  %v352_v25 = vcvt.s32.f32 %v336_v16  ;;  %v353_v26 = vcvt.s32.f32 %v337_v17 }
  0x3a   : > { %s1284_s13 = sshll.u32 %s2600_s20, 3  ;;  %s1286_s10 = sshll.u32 %s373_s21, 2  ;;  %v356_v28 = vcvt.s32.f32 %v340_v19  ;;  %v357_v29 = vcvt.s32.f32 %v341_v20  ;;  %v360_v30 = vcvt.s32.f32 %v344_v21  ;;  %v361_v31 = vcvt.s32.f32 %v345_v22 }
  0x3b   : > { %s1960_s17 = scalar_lea.vmem %s2529_s4, %s1284_s13  ;;  %s1965_s6 = scalar_lea.vmem %s2526_s1, %s1286_s10  ;;  %v364_v32 = vpack.c.bf16 %v349_v24, %v348_v23  ;;  %v366_v33 = vpack.c.bf16 %v353_v26, %v352_v25  ;;  %v334_v36 = vunpack.c.2.s8 %v328_v10  ;;  %v335_v37 = vunpack.c.3.s8 %v328_v10 }
  0x3c   : > { %v1351_v4 = vld [vmem:[%s1965_s6 + $0x38] sm:$0xff]  ;;  %v1350_v5 = vld [vmem:[%s1965_s6 + $0x30] sm:$0xff]  ;;  %v1349_v6 = vld [vmem:[%s1965_s6 + $0x28] sm:$0xff]  ;;  %v368_v34 = vpack.c.bf16 %v357_v29, %v356_v28  ;;  %v370_v35 = vpack.c.bf16 %v361_v31, %v360_v30  ;;  %v338_v38 = vunpack.c.2.s8 %v329_v11  ;;  %v339_v39 = vunpack.c.3.s8 %v329_v11  ;;  %p1319_p8 = scmp.ne.s32.totalorder %s1771_s23, 0 }
  0x3d   : > { %441 = vmatpush.bf16.msra.mxu0 %v1351_v4  ;;  %1400 = vmatpush.bf16.msra.mxu1 %v1351_v4  ;;  %v1348_v7 = vld [vmem:[%s1965_s6 + $0x20] sm:$0xff]  ;;  %v1347_v8 = vld [vmem:[%s1965_s6 + $0x18] sm:$0xff]  ;;  %v1346_v9 = vld [vmem:[%s1965_s6 + $0x10] sm:$0xff]  ;;  %v342_v40 = vunpack.c.2.s8 %v330_v12  ;;  %v343_v41 = vunpack.c.3.s8 %v330_v12  ;;  %v346_v42 = vunpack.c.2.s8 %v331_v13  ;;  %v347_v43 = vunpack.c.3.s8 %v331_v13 }
  0x3e   : > { %1401 = vmatpush.bf16.msra.mxu2 %v1351_v4  ;;  %1402 = vmatpush.bf16.msra.mxu3 %v1351_v4  ;;  %v1345_v18 = vld [vmem:[%s1965_s6 + $0x8] sm:$0xff]  ;;  %v1344_v27 = vld [vmem:[%s1965_s6] sm:$0xff]  ;;  %v350_v44 = vcvt.s32.f32 %v334_v36  ;;  %v351_v45 = vcvt.s32.f32 %v335_v37  ;;  %v354_v46 = vcvt.s32.f32 %v338_v38  ;;  %v355_v47 = vcvt.s32.f32 %v339_v39 }
  0x3f   : > { %v358_v48 = vcvt.s32.f32 %v342_v40  ;;  %v359_v49 = vcvt.s32.f32 %v343_v41  ;;  %v362_v50 = vcvt.s32.f32 %v346_v42  ;;  %v363_v51 = vcvt.s32.f32 %v347_v43 }
  0x40   : > { %v365_v52 = vpack.c.bf16 %v351_v45, %v350_v44  ;;  %v367_v53 = vpack.c.bf16 %v355_v47, %v354_v46 }
  0x41   : > { %442 = vmatpush.bf16.msra.mxu0 %v1350_v5  ;;  %1403 = vmatpush.bf16.msra.mxu1 %v1350_v5  ;;  %v369_v54 = vpack.c.bf16 %v359_v49, %v358_v48  ;;  %v371_v55 = vpack.c.bf16 %v363_v51, %v362_v50 }
  0x42   : > { %1404 = vmatpush.bf16.msra.mxu2 %v1350_v5  ;;  %1405 = vmatpush.bf16.msra.mxu3 %v1350_v5 }
  0x45   : > { %443 = vmatpush.bf16.msra.mxu0 %v1349_v6  ;;  %1406 = vmatpush.bf16.msra.mxu1 %v1349_v6 }
  0x46   : > { %1407 = vmatpush.bf16.msra.mxu2 %v1349_v6  ;;  %1408 = vmatpush.bf16.msra.mxu3 %v1349_v6 }
  0x49   : > { %444 = vmatpush.bf16.msra.mxu0 %v1348_v7  ;;  %1409 = vmatpush.bf16.msra.mxu1 %v1348_v7 }
  0x4a   : > { %1410 = vmatpush.bf16.msra.mxu2 %v1348_v7  ;;  %1411 = vmatpush.bf16.msra.mxu3 %v1348_v7 }
  0x4d   : > { %445 = vmatpush.bf16.msra.mxu0 %v1347_v8  ;;  %1412 = vmatpush.bf16.msra.mxu1 %v1347_v8 }
  0x4e   : > { %1413 = vmatpush.bf16.msra.mxu2 %v1347_v8  ;;  %1414 = vmatpush.bf16.msra.mxu3 %v1347_v8 }
  0x51   : > { %446 = vmatpush.bf16.msra.mxu0 %v1346_v9  ;;  %1415 = vmatpush.bf16.msra.mxu1 %v1346_v9 }
  0x52   : > { %1416 = vmatpush.bf16.msra.mxu2 %v1346_v9  ;;  %1417 = vmatpush.bf16.msra.mxu3 %v1346_v9 }
  0x55   : > { %447 = vmatpush.bf16.msra.mxu0 %v1345_v18  ;;  %1418 = vmatpush.bf16.msra.mxu1 %v1345_v18 }
  0x56   : > { %1419 = vmatpush.bf16.msra.mxu2 %v1345_v18  ;;  %1420 = vmatpush.bf16.msra.mxu3 %v1345_v18 }
  0x59   : > { %448 = vmatpush.bf16.msra.mxu0 %v1344_v27  ;;  %1421 = vmatpush.bf16.msra.mxu1 %v1344_v27 }
  0x5a   : > { %1422 = vmatpush.bf16.msra.mxu2 %v1344_v27  ;;  %1423 = vmatpush.bf16.msra.mxu3 %v1344_v27 }
  0x5c   : > { %449 = vmatmul.bf16.vlgmr.msra.gmra.mxu0 %v364_v32  ;;  %459 = vmatmul.bf16.vlgmr.msra.gmra.mxu1 %v366_v33 }
  0x5d   : > { %469 = vmatmul.bf16.vlgmr.msra.gmra.mxu2 %v368_v34  ;;  %479 = vmatmul.bf16.vlgmr.msra.gmra.mxu3 %v370_v35 }
  0x6c   : > { %454 = vmatmul.bf16.gmra.mxu0 %v365_v52  ;;  %464 = vmatmul.bf16.gmra.mxu1 %v367_v53 }
  0x6d   : > { %474 = vmatmul.bf16.gmra.mxu2 %v369_v54  ;;  %484 = vmatmul.bf16.gmra.mxu3 %v371_v55 }
  0xd9   : > { %v450_v56 = vpop.f32.mrf.mxu0  ;;  %v460_v57 = vpop.f32.mrf.mxu1 }
  0xe0   : > { %v470_v58 = vpop.f32.mrf.mxu2  ;;  %v1979_v59 = vpop.f32.mrf.mxu3 }
  0xe1   : > { %v452_v60 = vpop.f32.mrf.mxu0  ;;  %v462_v61 = vpop.f32.mrf.mxu1 }
  0xe8   : > { %v472_v62 = vpop.f32.mrf.mxu2  ;;  %v1981_v63 = vpop.f32.mrf.mxu3 }
  0xe9   : > { %v455_v0 = vpop.f32.mrf.mxu0  ;;  %v465_v1 = vpop.f32.mrf.mxu1 }
  0xf0   : > { %v475_v2 = vpop.f32.mrf.mxu2  ;;  %v1983_v3 = vpop.f32.mrf.mxu3 }
  0xf1   : > { %v457_v4 = vpop.f32.mrf.mxu0  ;;  %v467_v5 = vpop.f32.mrf.mxu1 }
  0xf4   : > { %493 = sbr.rel (%p1319_p8) target bundleno = 265 (0x109), region = 86 }
  0xf8   : > { %v477_v6 = vpop.f32.mrf.mxu2  ;;  %v1985_v7 = vpop.f32.mrf.mxu3 }
  0xf9   : > { %494 = vst [vmem:[#allocation2 + $0x30] sm:$0xff] %v450_v56 }
  0xfa   : > { %495 = vst [vmem:[#allocation2] sm:$0xff] %v452_v60 }
  0xfb   : > { %496 = vst [vmem:[#allocation2 + $0x58] sm:$0xff] %v455_v0 }
  0xfc   : > { %497 = vst [vmem:[#allocation2 + $0x18] sm:$0xff] %v457_v4 }
  0xfd   : > { %498 = vst [vmem:[#allocation2 + $0x50] sm:$0xff] %v460_v57 }
  0xfe   : > { %499 = vst [vmem:[#allocation2 + $0x68] sm:$0xff] %v462_v61 }
  0xff   : > { %500 = vst [vmem:[#allocation2 + $0x8] sm:$0xff] %v465_v1 }
 0x100   : > { %501 = vst [vmem:[#allocation2 + $0x48] sm:$0xff] %v467_v5 }
 0x101   : > { %502 = vst [vmem:[#allocation2 + $0x40] sm:$0xff] %v470_v58 }
 0x102   : > { %503 = vst [vmem:[#allocation2 + $0x20] sm:$0xff] %v472_v62 }
 0x103   : > { %504 = vst [vmem:[#allocation2 + $0x10] sm:$0xff] %v475_v2 }
 0x104   : > { %505 = vst [vmem:[#allocation2 + $0x38] sm:$0xff] %v477_v6 }
 0x105   : > { %506 = vst [vmem:[#allocation2 + $0x60] sm:$0xff] %v1979_v59 }
 0x106   : > { %507 = vst [vmem:[#allocation2 + $0x70] sm:$0xff] %v1981_v63 }
 0x107   : > { %508 = vst [vmem:[#allocation2 + $0x78] sm:$0xff] %v1983_v3 }
 0x108   : > { %509 = vst [vmem:[#allocation2 + $0x28] sm:$0xff] %v1985_v7 }
 0x109 PF: > { %p1320_p9 = scmp.le.s32.totalorder %s1771_s23, 0 }
 0x10b   : > { %513 = sbr.rel (%p1320_p9) target bundleno = 291 (0x123), region = 90 }
 0x110   : > { %v514_v8 = vld [vmem:[#allocation2 + $0x30] sm:$0xff]  ;;  %v515_v9 = vld [vmem:[#allocation2] sm:$0xff]  ;;  %v516_v10 = vld [vmem:[#allocation2 + $0x58] sm:$0xff] }
 0x111   : > { %v530_v11 = vadd.f32 %v514_v8, %v450_v56  ;;  %v531_v12 = vadd.f32 %v515_v9, %v452_v60  ;;  %v532_v13 = vadd.f32 %v516_v10, %v455_v0  ;;  %v517_v14 = vld [vmem:[#allocation2 + $0x18] sm:$0xff]  ;;  %v518_v15 = vld [vmem:[#allocation2 + $0x50] sm:$0xff]  ;;  %v519_v16 = vld [vmem:[#allocation2 + $0x68] sm:$0xff] }
 0x112   : > { %v533_v17 = vadd.f32 %v517_v14, %v457_v4  ;;  %v520_v18 = vld [vmem:[#allocation2 + $0x8] sm:$0xff]  ;;  %v534_v19 = vadd.f32 %v518_v15, %v460_v57  ;;  %v535_v21 = vadd.f32 %v519_v16, %v462_v61  ;;  %v522_v22 = vld [vmem:[#allocation2 + $0x40] sm:$0xff]  ;;  %v524_v26 = vld [vmem:[#allocation2 + $0x10] sm:$0xff] }
 0x113   : > { %546 = vst [vmem:[#allocation2 + $0x30] sm:$0xff] %v530_v11  ;;  %v521_v20 = vld [vmem:[#allocation2 + $0x48] sm:$0xff]  ;;  %v536_v23 = vadd.f32 %v520_v18, %v465_v1  ;;  %v523_v24 = vld [vmem:[#allocation2 + $0x20] sm:$0xff]  ;;  %v538_v27 = vadd.f32 %v522_v22, %v470_v58  ;;  %v525_v28 = vld [vmem:[#allocation2 + $0x38] sm:$0xff]  ;;  %v540_v31 = vadd.f32 %v524_v26, %v475_v2 }
 0x114   : > { %547 = vst [vmem:[#allocation2] sm:$0xff] %v531_v12  ;;  %v537_v25 = vadd.f32 %v521_v20, %v467_v5  ;;  %v539_v29 = vadd.f32 %v523_v24, %v472_v62  ;;  %v526_v30 = vld [vmem:[#allocation2 + $0x60] sm:$0xff]  ;;  %v527_v32 = vld [vmem:[#allocation2 + $0x70] sm:$0xff]  ;;  %v541_v33 = vadd.f32 %v525_v28, %v477_v6  ;;  %v528_v34 = vld [vmem:[#allocation2 + $0x78] sm:$0xff] }
 0x115   : > { %548 = vst [vmem:[#allocation2 + $0x58] sm:$0xff] %v532_v13  ;;  %v542_v35 = vadd.f32 %v526_v30, %v1979_v59  ;;  %v529_v36 = vld [vmem:[#allocation2 + $0x28] sm:$0xff]  ;;  %v543_v37 = vadd.f32 %v527_v32, %v1981_v63  ;;  %v544_v38 = vadd.f32 %v528_v34, %v1983_v3 }
 0x116   : > { %549 = vst [vmem:[#allocation2 + $0x18] sm:$0xff] %v533_v17  ;;  %v545_v39 = vadd.f32 %v529_v36, %v1985_v7 }
 0x117   : > { %550 = vst [vmem:[#allocation2 + $0x50] sm:$0xff] %v534_v19 }
 0x118   : > { %551 = vst [vmem:[#allocation2 + $0x68] sm:$0xff] %v535_v21 }
 0x119   : > { %552 = vst [vmem:[#allocation2 + $0x8] sm:$0xff] %v536_v23 }
 0x11a   : > { %553 = vst [vmem:[#allocation2 + $0x48] sm:$0xff] %v537_v25 }
 0x11b   : > { %554 = vst [vmem:[#allocation2 + $0x40] sm:$0xff] %v538_v27 }
 0x11c   : > { %555 = vst [vmem:[#allocation2 + $0x20] sm:$0xff] %v539_v29 }
 0x11d   : > { %556 = vst [vmem:[#allocation2 + $0x10] sm:$0xff] %v540_v31 }
 0x11e   : > { %557 = vst [vmem:[#allocation2 + $0x38] sm:$0xff] %v541_v33 }
 0x11f   : > { %558 = vst [vmem:[#allocation2 + $0x60] sm:$0xff] %v542_v35 }
 0x120   : > { %559 = vst [vmem:[#allocation2 + $0x70] sm:$0xff] %v543_v37 }
 0x121   : > { %560 = vst [vmem:[#allocation2 + $0x78] sm:$0xff] %v544_v38 }
 0x122   : > { %561 = vst [vmem:[#allocation2 + $0x28] sm:$0xff] %v545_v39 }
 0x123 PF: > { %p1321_p10 = scmp.ne.s32.totalorder %s1771_s23, 1 }
 0x125   : > { %565 = sbr.rel (%p1321_p10) target bundleno = 642 (0x282), region = 94 }
 0x12a   : > { %v575_v40 = vld [vmem:[%s1960_s17 + $0x48] sm:$0xff]  ;;  %v574_v41 = vld [vmem:[%s1960_s17 + $0x40] sm:$0xff]  ;;  %v1792_v43 = vmov 0   ;;  %v709_v47 = vld [vmem:[#allocation4 + $0x78] sm:$0xff] }
 0x12b   : > { %v566_v42 = vld [vmem:[%s1960_s17] sm:$0xff]  ;;  %1577 = vset.pattern.permute.xlu2 %v1792_v43  ;;  %1576 = vset.pattern.permute.xlu1 %v1792_v43  ;;  %v579_v44 = vld [vmem:[%s1960_s17 + $0x68] sm:$0xff]  ;;  %v708_v48 = vld [vmem:[#allocation4 + $0x70] sm:$0xff] }
 0x12c   : > { %1575 = vset.pattern.permute.xlu0 %v1792_v43  ;;  %645 = vperm.xlu2 %1577, %v575_v40   ;;  %v578_v45 = vld [vmem:[%s1960_s17 + $0x60] sm:$0xff]  ;;  %v707_v49 = vld [vmem:[#allocation4 + $0x68] sm:$0xff]  ;;  %v576_v50 = vld [vmem:[%s1960_s17 + $0x50] sm:$0xff] }
 0x12d   : > { %640 = vperm.xlu0 %1575, %v574_v41   ;;  %600 = vperm.xlu1 %1576, %v566_v42   ;;  %v570_v46 = vld [vmem:[%s1960_s17 + $0x20] sm:$0xff]  ;;  %v567_v51 = vld [vmem:[%s1960_s17 + $0x8] sm:$0xff]  ;;  %v572_v53 = vld [vmem:[%s1960_s17 + $0x30] sm:$0xff] }
 0x12e   : > { %714 = vmatpush.msra.mxu0 %v709_v47  ;;  %1425 = vmatpush.msra.mxu2 %v709_v47  ;;  %v571_v52 = vld [vmem:[%s1960_s17 + $0x28] sm:$0xff]  ;;  %v580_v54 = vld [vmem:[%s1960_s17 + $0x70] sm:$0xff]  ;;  %v569_v56 = vld [vmem:[%s1960_s17 + $0x18] sm:$0xff] }
 0x12f   : > { %1424 = vmatpush.msra.mxu1 %v709_v47  ;;  %1426 = vmatpush.msra.mxu3 %v709_v47  ;;  %v568_v55 = vld [vmem:[%s1960_s17 + $0x10] sm:$0xff]  ;;  %v577_v57 = vld [vmem:[%s1960_s17 + $0x58] sm:$0xff]  ;;  %v706_v60 = vld [vmem:[#allocation4 + $0x60] sm:$0xff] }
 0x130   : > { %715 = vmatpush.msra.mxu0 %v708_v48  ;;  %1428 = vmatpush.msra.mxu2 %v708_v48  ;;  %v581_v58 = vld [vmem:[%s1960_s17 + $0x78] sm:$0xff]  ;;  %v704_v62 = vld [vmem:[#allocation4 + $0x50] sm:$0xff]  ;;  %v703_v63 = vld [vmem:[#allocation4 + $0x48] sm:$0xff] }
 0x131   : > { %1427 = vmatpush.msra.mxu1 %v708_v48  ;;  %1429 = vmatpush.msra.mxu3 %v708_v48  ;;  %v573_v59 = vld [vmem:[%s1960_s17 + $0x38] sm:$0xff]  ;;  %v702_v0 = vld [vmem:[#allocation4 + $0x40] sm:$0xff]  ;;  %v700_v2 = vld [vmem:[#allocation4 + $0x30] sm:$0xff] }
 0x132   : > { %716 = vmatpush.msra.mxu0 %v707_v49  ;;  %1431 = vmatpush.msra.mxu2 %v707_v49  ;;  %v705_v61 = vld [vmem:[#allocation4 + $0x58] sm:$0xff]  ;;  %v699_v3 = vld [vmem:[#allocation4 + $0x28] sm:$0xff]  ;;  %v698_v4 = vld [vmem:[#allocation4 + $0x20] sm:$0xff] }
 0x133   : > { %1430 = vmatpush.msra.mxu1 %v707_v49  ;;  %1432 = vmatpush.msra.mxu3 %v707_v49  ;;  %v701_v1 = vld [vmem:[#allocation4 + $0x38] sm:$0xff]  ;;  %v696_v6 = vld [vmem:[#allocation4 + $0x10] sm:$0xff]  ;;  %v695_v7 = vld [vmem:[#allocation4 + $0x8] sm:$0xff] }
 0x134   : > { %665 = vperm.xlu2 %1577, %v579_v44   ;;  %717 = vmatpush.msra.mxu0 %v706_v60  ;;  %v697_v5 = vld [vmem:[#allocation4 + $0x18] sm:$0xff]  ;;  %v694_v8 = vld [vmem:[#allocation4] sm:$0xff]  ;;  %v582_v10 = vld [vmem:[#allocation2 + $0x30] sm:$0xff] }
 0x135   : > { %660 = vperm.xlu0 %1575, %v578_v45   ;;  %620 = vperm.xlu1 %1576, %v570_v46   ;;  %v590_v11 = vld [vmem:[#allocation2 + $0x40] sm:$0xff]  ;;  %v586_v18 = vld [vmem:[#allocation2 + $0x50] sm:$0xff]  ;;  %v587_v27 = vld [vmem:[#allocation2 + $0x68] sm:$0xff] }
 0x136   : > { %1434 = vmatpush.msra.mxu2 %v706_v60  ;;  %1433 = vmatpush.msra.mxu1 %v706_v60  ;;  %v591_v17 = vld [vmem:[#allocation2 + $0x20] sm:$0xff]  ;;  %v592_v28 = vld [vmem:[#allocation2 + $0x10] sm:$0xff]  ;;  %v584_v37 = vld [vmem:[#allocation2 + $0x58] sm:$0xff] }
 0x137   : > { %1435 = vmatpush.msra.mxu3 %v706_v60  ;;  %718 = vmatpush.msra.mxu0 %v705_v61  ;;  %v594_v19 = vld [vmem:[#allocation2 + $0x60] sm:$0xff]  ;;  %v595_v29 = vld [vmem:[#allocation2 + $0x70] sm:$0xff]  ;;  %v588_v38 = vld [vmem:[#allocation2 + $0x8] sm:$0xff] }
 0x138   : > { %1437 = vmatpush.msra.mxu2 %v705_v61  ;;  %1436 = vmatpush.msra.mxu1 %v705_v61  ;;  %v583_v26 = vld [vmem:[#allocation2] sm:$0xff]  ;;  %v596_v39 = vld [vmem:[#allocation2 + $0x78] sm:$0xff]  ;;  %v597_v47 = vld [vmem:[#allocation2 + $0x28] sm:$0xff] }
 0x139   : > { %1438 = vmatpush.msra.mxu3 %v705_v61  ;;  %719 = vmatpush.msra.mxu0 %v704_v62  ;;  %v585_v45 = vld [vmem:[#allocation2 + $0x18] sm:$0xff] }
 0x13a   : > { %1440 = vmatpush.msra.mxu2 %v704_v62  ;;  %1439 = vmatpush.msra.mxu1 %v704_v62  ;;  %v593_v48 = vld [vmem:[#allocation2 + $0x38] sm:$0xff] }
 0x13b   : > { %1441 = vmatpush.msra.mxu3 %v704_v62  ;;  %720 = vmatpush.msra.mxu0 %v703_v63 }
 0x13c   : > { %650 = vperm.xlu2 %1577, %v576_v50   ;;  %1443 = vmatpush.msra.mxu2 %v703_v63 }
 0x13d   : > { %605 = vperm.xlu0 %1575, %v567_v51   ;;  %625 = vperm.xlu1 %1576, %v571_v52  }
 0x13e   : > { %1442 = vmatpush.msra.mxu1 %v703_v63  ;;  %1444 = vmatpush.msra.mxu3 %v703_v63 }
 0x13f   : > { %721 = vmatpush.msra.mxu0 %v702_v0  ;;  %1446 = vmatpush.msra.mxu2 %v702_v0 }
 0x140   : > { %1445 = vmatpush.msra.mxu1 %v702_v0  ;;  %1447 = vmatpush.msra.mxu3 %v702_v0 }
 0x141   : > { %722 = vmatpush.msra.mxu0 %v701_v1  ;;  %1449 = vmatpush.msra.mxu2 %v701_v1 }
 0x142   : > { %1448 = vmatpush.msra.mxu1 %v701_v1  ;;  %1450 = vmatpush.msra.mxu3 %v701_v1 }
 0x143   : > { %723 = vmatpush.msra.mxu0 %v700_v2  ;;  %1452 = vmatpush.msra.mxu2 %v700_v2 }
 0x144   : > { %630 = vperm.xlu2 %1577, %v572_v53   ;;  %1451 = vmatpush.msra.mxu1 %v700_v2 }
 0x145   : > { %670 = vperm.xlu0 %1575, %v580_v54   ;;  %610 = vperm.xlu1 %1576, %v568_v55   ;;  %v589_v54 = vld [vmem:[#allocation2 + $0x48] sm:$0xff] }
 0x146   : > { %1453 = vmatpush.msra.mxu3 %v700_v2  ;;  %724 = vmatpush.msra.mxu0 %v699_v3 }
 0x147   : > { %1455 = vmatpush.msra.mxu2 %v699_v3  ;;  %1454 = vmatpush.msra.mxu1 %v699_v3 }
 0x148   : > { %1456 = vmatpush.msra.mxu3 %v699_v3  ;;  %725 = vmatpush.msra.mxu0 %v698_v4 }
 0x149   : > { %1458 = vmatpush.msra.mxu2 %v698_v4  ;;  %1457 = vmatpush.msra.mxu1 %v698_v4 }
 0x14a   : > { %1459 = vmatpush.msra.mxu3 %v698_v4  ;;  %726 = vmatpush.msra.mxu0 %v697_v5 }
 0x14b   : > { %1461 = vmatpush.msra.mxu2 %v697_v5  ;;  %1460 = vmatpush.msra.mxu1 %v697_v5 }
 0x14c   : > { %615 = vperm.xlu2 %1577, %v569_v56   ;;  %1462 = vmatpush.msra.mxu3 %v697_v5 }
 0x14d   : > { %655 = vperm.xlu0 %1575, %v577_v57   ;;  %675 = vperm.xlu1 %1576, %v581_v58   ;;  %v2068_v57 = vld [vmem:[%s2528_s3] ss:$0 sm:$0xff] }
 0x14e   : > { %727 = vmatpush.msra.mxu0 %v696_v6  ;;  %1464 = vmatpush.msra.mxu2 %v696_v6 }
 0x14f   : > { %1463 = vmatpush.msra.mxu1 %v696_v6  ;;  %1465 = vmatpush.msra.mxu3 %v696_v6 }
 0x150   : > { %728 = vmatpush.msra.mxu0 %v695_v7  ;;  %1467 = vmatpush.msra.mxu2 %v695_v7 }
 0x151   : > { %1466 = vmatpush.msra.mxu1 %v695_v7  ;;  %1468 = vmatpush.msra.mxu3 %v695_v7 }
 0x152   : > { %729 = vmatpush.msra.mxu0 %v694_v8  ;;  %1470 = vmatpush.msra.mxu2 %v694_v8 }
 0x153   : > { %1469 = vmatpush.msra.mxu1 %v694_v8  ;;  %1471 = vmatpush.msra.mxu3 %v694_v8 }
 0x155   : > { %635 = vperm.xlu0 %1575, %v573_v59  }
 0x186   : > { %v2017_v9 = vpop.permute.xlu2 %645 }
 0x187   : > { %v687_v20 = vmul.f32 %v2017_v9, %v591_v17 }
 0x18e   : > { %v2019_v12 = vpop.permute.xlu2 %665 }
 0x18f   : > { %v691_v35 = vmul.f32 %v2019_v12, %v595_v29 }
 0x196   : > { %v2034_v25 = vpop.permute.xlu2 %650 }
 0x197   : > { %v688_v34 = vmul.f32 %v2034_v25, %v592_v28 }
 0x19e   : > { %v2044_v36 = vpop.permute.xlu2 %630 }
 0x19f   : > { %v2021_v13 = vpop.permute.xlu0 %640  ;;  %v2023_v14 = vpop.permute.xlu1 %600  ;;  %v684_v43 = vmul.f32 %v2044_v36, %v588_v38 }
 0x1a0   : > { %v678_v15 = vmul.f32 %v2023_v14, %v582_v10  ;;  %v686_v16 = vmul.f32 %v2021_v13, %v590_v11 }
 0x1a2   : > { %730 = vmatmul.f32.vlgmr.msra.gmra.mxu0 %v678_v15  ;;  %754 = vmatmul.f32.vlgmr.msra.gmra.mxu2 %v686_v16 }
 0x1a6   : > { %v2053_v46 = vpop.permute.xlu2 %615 }
 0x1a7   : > { %v2028_v21 = vpop.permute.xlu0 %660  ;;  %v2030_v22 = vpop.permute.xlu1 %620  ;;  %v681_v51 = vmul.f32 %v2053_v46, %v585_v45 }
 0x1a8   : > { %v682_v23 = vmul.f32 %v2030_v22, %v586_v18  ;;  %v690_v24 = vmul.f32 %v2028_v21, %v594_v19 }
 0x1aa   : > { %742 = vmatmul.f32.vlgmr.msra.gmra.mxu1 %v682_v23  ;;  %757 = vmatmul.f32.gmra.mxu2 %v687_v20 }
 0x1ab   : > { %766 = vmatmul.f32.vlgmr.msra.gmra.mxu3 %v690_v24 }
 0x1af   : > { %v2036_v30 = vpop.permute.xlu0 %605  ;;  %v2038_v31 = vpop.permute.xlu1 %625 }
 0x1b0   : > { %v679_v32 = vmul.f32 %v2036_v30, %v583_v26  ;;  %v683_v33 = vmul.f32 %v2038_v31, %v587_v27 }
 0x1b2   : > { %733 = vmatmul.f32.gmra.mxu0 %v679_v32  ;;  %745 = vmatmul.f32.gmra.mxu1 %v683_v33 }
 0x1b3   : > { %760 = vmatmul.f32.gmra.mxu2 %v688_v34  ;;  %769 = vmatmul.f32.gmra.mxu3 %v691_v35 }
 0x1b7   : > { %v2046_v40 = vpop.permute.xlu0 %670  ;;  %v2048_v41 = vpop.permute.xlu1 %610 }
 0x1b8   : > { %v680_v42 = vmul.f32 %v2048_v41, %v584_v37  ;;  %v692_v44 = vmul.f32 %v2046_v40, %v596_v39 }
 0x1ba   : > { %736 = vmatmul.f32.gmra.mxu0 %v680_v42  ;;  %748 = vmatmul.f32.gmra.mxu1 %v684_v43 }
 0x1bb   : > { %772 = vmatmul.f32.gmra.mxu3 %v692_v44 }
 0x1bf   : > { %v2055_v49 = vpop.permute.xlu0 %655  ;;  %v2057_v50 = vpop.permute.xlu1 %675 }
 0x1c0   : > { %v693_v52 = vmul.f32 %v2057_v50, %v597_v47  ;;  %v689_v53 = vmul.f32 %v2055_v49, %v593_v48 }
 0x1c2   : > { %739 = vmatmul.f32.gmra.mxu0 %v681_v51  ;;  %763 = vmatmul.f32.gmra.mxu2 %v689_v53 }
 0x1c3   : > { %775 = vmatmul.f32.gmra.mxu3 %v693_v52 }
 0x1c7   : > { %v2062_v55 = vpop.permute.xlu0 %635 }
 0x1c8   : > { %v685_v56 = vmul.f32 %v2062_v55, %v589_v54 }
 0x1ca   : > { %751 = vmatmul.f32.gmra.mxu1 %v685_v56 }
 0x21f   : > { %v731_v58 = vpop.f32.mrf.mxu0 }
 0x220   : > { %v2071_v59 = vadd.f32 %v2068_v57, %v731_v58 }
 0x222   : > { %v1322_v60 = vmul.f32 -1.442695, %v2071_v59 }
 0x224   : > { %1579 = vpow2.f32 %v1322_v60 }
 0x225   : > { %v755_v61 = vpop.f32.mrf.mxu2 }
 0x226   : > { %v2075_v62 = vadd.f32 %v2068_v57, %v755_v61 }
 0x227   : > { %v743_v63 = vpop.f32.mrf.mxu1 }
 0x228   : > { %v1330_v0 = vmul.f32 -1.442695, %v2075_v62  ;;  %v2079_v1 = vadd.f32 %v2068_v57, %v743_v63 }
 0x22a   : > { %v1580_v2 = vpop.eup %1579  ;;  %1581 = vpow2.f32 %v1330_v0  ;;  %v1326_v3 = vmul.f32 -1.442695, %v2079_v1 }
 0x22b   : > { %v827_v4 = vadd.f32 1.0, %v1580_v2 }
 0x22c   : > { %1583 = vpow2.f32 %v1326_v3 }
 0x22d   : > { %1585 = vrcp.f32 %v827_v4  ;;  %v758_v5 = vpop.f32.mrf.mxu2  ;;  %v852_v32 = vand.u32 2147483647, %v827_v4  ;;  %vm848_vm0 = vweird.f32 %v827_v4  ;;  %v854_v39 = vand.u32 2147483648, %v827_v4 }
 0x22e   : > { %v2083_v6 = vadd.f32 %v2068_v57, %v758_v5  ;;  %v767_v7 = vpop.f32.mrf.mxu3 }
 0x22f   : > { %v2086_v8 = vadd.f32 %v2068_v57, %v767_v7  ;;  %v734_v10 = vpop.f32.mrf.mxu0  ;;  %v746_v11 = vpop.f32.mrf.mxu1  ;;  %vm2112_vm1 = vcmp.eq.f32.partialorder %v852_v32, 8.507059e+37  ;;  %v855_v0 = vor.u32 1.1754944e-38, %v854_v39 }
 0x230   : > { %v1582_v15 = vpop.eup %1581  ;;  %v1331_v16 = vmul.f32 -1.442695, %v2083_v6  ;;  %v2090_v17 = vadd.f32 %v2068_v57, %v734_v10  ;;  %v2097_v24 = vadd.f32 %v2068_v57, %v746_v11 }
 0x231   : > { %v2092_v18 = vadd.f32 1.0, %v1582_v15  ;;  %v1334_v19 = vmul.f32 -1.442695, %v2086_v8 }
 0x232   : > { %v1584_v20 = vpop.eup %1583  ;;  %1587 = vpow2.f32 %v1331_v16  ;;  %v1323_v23 = vmul.f32 -1.442695, %v2090_v17  ;;  %v1327_v33 = vmul.f32 -1.442695, %v2097_v24 }
 0x233   : > { %v2099_v26 = vpop.eup %1585  ;;  %1589 = vrcp.f32 %v2092_v18  ;;  %v2103_v28 = vadd.f32 1.0, %v1584_v20  ;;  %v972_v47 = vand.u32 2147483647, %v2092_v18  ;;  %v974_v51 = vand.u32 2147483648, %v2092_v18 }
 0x234   : > { %v844_v27 = vmul.f32 %v2099_v26, %v827_v4  ;;  %1591 = vpow2.f32 %v1334_v19  ;;  %vm849_vm2 = vweird.f32 %v2099_v26  ;;  %vm968_vm3 = vweird.f32 %v2092_v18 }
 0x235   : > { %1593 = vpow2.f32 %v1323_v23  ;;  %v914_v3 = vand.u32 2147483648, %v2103_v28  ;;  %vm2147_vm4 = vmor %vm848_vm0, %vm849_vm2  ;;  %vm2152_vm6 = vcmp.eq.f32.partialorder %v972_v47, 8.507059e+37  ;;  %v975_v19 = vor.u32 1.1754944e-38, %v974_v51 }
 0x236   : > { %v845_v29 = vsub.f32 1.0, %v844_v27  ;;  %1595 = vrcp.f32 %v2103_v28  ;;  %v761_v37 = vpop.f32.mrf.mxu2  ;;  %v770_v53 = vpop.f32.mrf.mxu3  ;;  %vm908_vm9 = vweird.f32 %v2103_v28 }
 0x237   : > { %1597 = vpow2.f32 %v1327_v33  ;;  %v2123_v52 = vadd.f32 %v2068_v57, %v761_v37  ;;  %v737_v54 = vpop.f32.mrf.mxu0  ;;  %v2139_v7 = vadd.f32 %v2068_v57, %v770_v53  ;;  %v749_v11 = vpop.f32.mrf.mxu1 }
 0x238   : > { %v1588_v34 = vpop.eup %1587  ;;  %v846_v35 = vmul.f32 %v2099_v26, %v845_v29  ;;  %v2142_v10 = vadd.f32 %v2068_v57, %v737_v54  ;;  %v2167_v37 = vadd.f32 %v2068_v57, %v749_v11 }
 0x239   : > { %v2108_v38 = vpop.eup %1589  ;;  %v2110_v42 = vadd.f32 1.0, %v1588_v34  ;;  %v1332_v20 = vmul.f32 -1.442695, %v2123_v52  ;;  %v912_v34 = vand.u32 2147483647, %v2103_v28 }
 0x23a   : > { %v1592_v43 = vpop.eup %1591  ;;  %v964_v45 = vmul.f32 %v2108_v38, %v2092_v18  ;;  %v847_v58 = vadd.f32 %v2099_v26, %v846_v35  ;;  %vm969_vm5 = vweird.f32 %v2108_v38  ;;  %v2164_v35 = vor.u32 1.1754944e-38, %v914_v3 }
 0x23b   : > { %v1594_v48 = vpop.eup %1593  ;;  %1599 = vrcp.f32 %v2110_v42  ;;  %v2128_v61 = vadd.f32 1.0, %v1592_v43  ;;  %v987_v29 = vand.u32 2147483647, %v2110_v42  ;;  %vm2171_vm7 = vmor %vm968_vm3, %vm969_vm5  ;;  %vm983_vm8 = vweird.f32 %v2110_v42 }
 0x23c   : > { %v2125_v56 = vpop.eup %1595  ;;  %v965_v60 = vsub.f32 1.0, %v964_v45  ;;  %v2130_v63 = vadd.f32 1.0, %v1594_v48  ;;  %v851_v27 = vsel %vm2147_vm4, %v2099_v26, %v847_v58  ;;  %v1335_v43 = vmul.f32 -1.442695, %v2139_v7 }
 0x23d   : > { %v904_v2 = vmul.f32 %v2125_v56, %v2103_v28  ;;  %1601 = vrcp.f32 %v2128_v61  ;;  %v1598_v23 = vpop.eup %1597  ;;  %v1324_v45 = vmul.f32 -1.442695, %v2142_v10  ;;  %v856_v47 = vsel %vm2112_vm1, %v855_v0, %v851_v27 }
 0x23e   : > { %v966_v5 = vmul.f32 %v2108_v38, %v965_v60  ;;  %1603 = vrcp.f32 %v2130_v63  ;;  %v989_v18 = vand.u32 2147483648, %v2110_v42  ;;  %v2186_v51 = vadd.f32 1.0, %v1598_v23 }
 0x23f   : > { %v905_v33 = vsub.f32 1.0, %v904_v2  ;;  %vm909_vm10 = vweird.f32 %v2125_v56  ;;  %vm2191_vm11 = vcmp.eq.f32.partialorder %v987_v29, 8.507059e+37  ;;  %1605 = vpow2.f32 %v1332_v20 }
 0x240   : > { %v967_v4 = vadd.f32 %v2108_v38, %v966_v5  ;;  %v867_v60 = vand.u32 2147483647, %v2130_v63  ;;  %1607 = vrcp.f32 %v2186_v51  ;;  %v1083_v2 = vmul.f32 %v856_v47, %v2071_v59  ;;  %vm2230_vm3 = vmor %vm908_vm9, %vm909_vm10 }
 0x241   : > { %v1600_v32 = vpop.eup %1599  ;;  %v906_v44 = vmul.f32 %v2125_v56, %v905_v33  ;;  %v990_v11 = vor.u32 1.1754944e-38, %v989_v18  ;;  %v1034_v20 = vand.u32 2147483648, %v2128_v61  ;;  %vm2205_vm13 = vcmp.eq.f32.partialorder %v912_v34, 8.507059e+37 }
 0x242   : > { %v979_v26 = vmul.f32 %v1600_v32, %v2110_v42  ;;  %v971_v48 = vsel %vm2171_vm7, %v2108_v38, %v967_v4  ;;  %vm984_vm12 = vweird.f32 %v1600_v32  ;;  %vm863_vm14 = vweird.f32 %v2130_v63 }
 0x243   : > { %v2188_v53 = vpop.eup %1601  ;;  %v976_v3 = vsel %vm2152_vm6, %v975_v19, %v971_v48  ;;  %v869_v59 = vand.u32 2147483648, %v2130_v63  ;;  %1609 = vpow2.f32 %v1335_v43  ;;  %v907_v19 = vadd.f32 %v2125_v56, %v906_v44  ;;  %vm985_vm15 = vmor %vm983_vm8, %vm984_vm12 }
 0x244   : > { %v980_v54 = vsub.f32 1.0, %v979_v26  ;;  %v1024_v38 = vmul.f32 %v2188_v53, %v2128_v61  ;;  %v1604_v0 = vpop.eup %1603  ;;  %v1091_v16 = vmul.f32 %v976_v3, %v2075_v62  ;;  %vm1028_vm0 = vweird.f32 %v2128_v61 }
 0x245   : > { %v859_v23 = vmul.f32 %v1604_v0, %v2130_v63  ;;  %vm2216_vm1 = vcmp.eq.f32.partialorder %v867_v60, 8.507059e+37  ;;  %v1606_v34 = vpop.eup %1605  ;;  %vm864_vm2 = vweird.f32 %v1604_v0  ;;  %1611 = vpow2.f32 %v1324_v45 }
 0x246   : > { %v981_v5 = vmul.f32 %v1600_v32, %v980_v54  ;;  %v1025_v15 = vsub.f32 1.0, %v1024_v38  ;;  %v1328_v26 = vmul.f32 -1.442695, %v2167_v37  ;;  %v1608_v43 = vpop.eup %1607  ;;  %v2224_v48 = vadd.f32 1.0, %v1606_v34  ;;  %vm865_vm5 = vmor %vm863_vm14, %vm864_vm2 }
 0x247   : > { %v860_v29 = vsub.f32 1.0, %v859_v23  ;;  %v870_v45 = vor.u32 1.1754944e-38, %v869_v59  ;;  %v919_v54 = vmul.f32 %v1608_v43, %v2186_v51  ;;  %v1107_v58 = vmul.f32 %v1091_v16, %v2021_v13  ;;  %v773_v13 = vpop.f32.mrf.mxu3 }
 0x248   : > { %v982_v4 = vadd.f32 %v1600_v32, %v981_v5  ;;  %v1026_v42 = vmul.f32 %v2188_v53, %v1025_v15  ;;  %1613 = vpow2.f32 %v1328_v26  ;;  %v911_v44 = vsel %vm2230_vm3, %v2125_v56, %v907_v19 }
 0x249   : > { %v861_v47 = vmul.f32 %v1604_v0, %v860_v29  ;;  %vm1029_vm4 = vweird.f32 %v2188_v53  ;;  %v1610_v28 = vpop.eup %1609  ;;  %v929_v3 = vand.u32 2147483648, %v2186_v51  ;;  %1615 = vrcp.f32 %v2224_v48 }
 0x24a   : > { %v986_v39 = vsel %vm985_vm15, %v1600_v32, %v982_v4  ;;  %v1027_v5 = vadd.f32 %v2188_v53, %v1026_v42  ;;  %v2249_v15 = vadd.f32 1.0, %v1610_v28  ;;  %vm924_vm6 = vweird.f32 %v1608_v43  ;;  %vm2265_vm7 = vmor %vm1028_vm0, %vm1029_vm4 }
 0x24b   : > { %v991_v62 = vsel %vm2191_vm11, %v990_v11, %v986_v39  ;;  %v862_v38 = vadd.f32 %v1604_v0, %v861_v47  ;;  %v927_v11 = vand.u32 2147483647, %v2186_v51  ;;  %v1612_v23 = vpop.eup %1611  ;;  %v916_v59 = vsel %vm2205_vm13, %v2164_v35, %v911_v44 }
 0x24c   : > { %v1092_v32 = vmul.f32 %v991_v62, %v2083_v6  ;;  %v920_v6 = vsub.f32 1.0, %v919_v54  ;;  %v1032_v16 = vand.u32 2147483647, %v2128_v61  ;;  %1617 = vrcp.f32 %v2249_v15  ;;  %v740_v61 = vpop.f32.mrf.mxu0  ;;  %v764_v54 = vpop.f32.mrf.mxu2 }
 0x24d   : > { %v866_v56 = vsel %vm865_vm5, %v1604_v0, %v862_v38  ;;  %v1099_v29 = vmul.f32 %v1083_v2, %v2023_v14  ;;  %vm923_vm8 = vweird.f32 %v2186_v51  ;;  %v930_v35 = vor.u32 1.1754944e-38, %v929_v3 }
 0x24e   : > { %v1108_v60 = vmul.f32 %v1092_v32, %v2017_v9  ;;  %v871_v63 = vsel %vm2216_vm1, %v870_v45, %v866_v56  ;;  %v921_v4 = vmul.f32 %v1608_v43, %v920_v6  ;;  %v1614_v0 = vpop.eup %1613  ;;  %vm925_vm9 = vmor %vm923_vm8, %vm924_vm6  ;;  %v2274_v14 = vadd.f32 1.0, %v1612_v23 }
 0x24f   : > { %v1084_v19 = vmul.f32 %v871_v63, %v2090_v17  ;;  %v1031_v17 = vsel %vm2265_vm7, %v2188_v53, %v1027_v5  ;;  %v2276_v2 = vadd.f32 1.0, %v1614_v0  ;;  %v2278_v39 = vpop.eup %1615  ;;  %v1087_v26 = vmul.f32 %v916_v59, %v2079_v1 }
 0x250   : > { %v1376_v9 = vpack.c.bf16 %v1108_v60, %v1107_v58  ;;  %v922_v27 = vadd.f32 %v1608_v43, %v921_v4  ;;  %v1035_v51 = vor.u32 1.1754944e-38, %v1034_v20  ;;  %vm928_vm10 = vcmp.eq.f32.partialorder %v927_v11, 8.507059e+37  ;;  %v752_v11 = vpop.f32.mrf.mxu1 }
 0x251   : > { %v1100_v34 = vmul.f32 %v1084_v19, %v2036_v30  ;;  %vm1033_vm11 = vcmp.eq.f32.partialorder %v1032_v16, 8.507059e+37  ;;  %1619 = vrcp.f32 %v2274_v14  ;;  %v2286_v18 = vadd.f32 %v2068_v57, %v773_v13 }
 0x252   : > { %1396 = vst [vmem:[%s1988_s30 + $0x20] sm:$0xff] %v1376_v9   ;;  %v926_v62 = vsel %vm925_vm9, %v1608_v43, %v922_v27  ;;  %v1036_v30 = vsel %vm1033_vm11, %v1035_v51, %v1031_v17  ;;  %v1618_v32 = vpop.eup %1617  ;;  %v994_v1 = vmul.f32 %v2278_v39, %v2224_v48  ;;  %1621 = vrcp.f32 %v2276_v2 }
 0x253   : > { %v1356_v42 = vpack.c.bf16 %v1100_v34, %v1099_v29  ;;  %v931_v53 = vsel %vm928_vm10, %v930_v35, %v926_v62  ;;  %v1103_v20 = vmul.f32 %v1087_v26, %v2030_v22  ;;  %v1039_v45 = vmul.f32 %v1618_v32, %v2249_v15 }
 0x254   : > { %v1088_v47 = vmul.f32 %v931_v53, %v2097_v24  ;;  %v776_v24 = vpop.f32.mrf.mxu3  ;;  %v1095_v58 = vmul.f32 %v1036_v30, %v2086_v8  ;;  %v1049_v28 = vand.u32 2147483648, %v2249_v15  ;;  %v1336_v60 = vmul.f32 -1.442695, %v2286_v18 }
 0x255   : > { %1357 = vst [vmem:[%s1988_s30] sm:$0xff] %v1356_v42   ;;  %v1040_v38 = vsub.f32 1.0, %v1039_v45  ;;  %v995_v3 = vsub.f32 1.0, %v994_v1  ;;  %v2301_v13 = vadd.f32 %v2068_v57, %v740_v61  ;;  %v2304_v22 = vadd.f32 %v2068_v57, %v764_v54 }
 0x256   : > { %v1104_v43 = vmul.f32 %v1088_v47, %v2038_v31  ;;  %v2307_v31 = vadd.f32 %v2068_v57, %v776_v24  ;;  %vm1044_vm12 = vweird.f32 %v1618_v32  ;;  %v1047_v5 = vand.u32 2147483647, %v2249_v15 }
 0x257   : > { %v2298_v6 = vpop.eup %1619  ;;  %v1041_v8 = vmul.f32 %v1618_v32, %v1040_v38  ;;  %vm1043_vm13 = vweird.f32 %v2249_v15  ;;  %1623 = vpow2.f32 %v1336_v60  ;;  %v1325_v9 = vmul.f32 -1.442695, %v2301_v13 }
 0x258   : > { %v1366_v44 = vpack.c.bf16 %v1104_v43, %v1103_v20  ;;  %v874_v56 = vmul.f32 %v2298_v6, %v2274_v14  ;;  %v2313_v23 = vpop.eup %1621  ;;  %v1333_v63 = vmul.f32 -1.442695, %v2304_v22  ;;  %v1050_v59 = vor.u32 1.1754944e-38, %v1049_v28  ;;  %vm1045_vm14 = vmor %vm1043_vm13, %vm1044_vm12 }
 0x259   : > { %v1042_v4 = vadd.f32 %v1618_v32, %v1041_v8  ;;  %v934_v19 = vmul.f32 %v2313_v23, %v2276_v2  ;;  %v996_v0 = vmul.f32 %v2278_v39, %v995_v3  ;;  %1625 = vpow2.f32 %v1325_v9 }
 0x25a   : > { %1394 = vst [vmem:[%s1988_s30 + $0x10] sm:$0xff] %v1366_v44   ;;  %v875_v16 = vsub.f32 1.0, %v874_v56  ;;  %v1337_v29 = vmul.f32 -1.442695, %v2307_v31  ;;  %v2323_v33 = vadd.f32 %v2068_v57, %v752_v11  ;;  %vm1048_vm15 = vcmp.eq.f32.partialorder %v1047_v5, 8.507059e+37 }
 0x25b   : > { %v1046_v15 = vsel %vm1045_vm14, %v1618_v32, %v1042_v4  ;;  %v935_v35 = vsub.f32 1.0, %v934_v19  ;;  %v1002_v17 = vand.u32 2147483647, %v2224_v48  ;;  %1627 = vpow2.f32 %v1333_v63 }
 0x25c   : > { %v876_v27 = vmul.f32 %v2298_v6, %v875_v16  ;;  %v1051_v34 = vsel %vm1048_vm15, %v1050_v59, %v1046_v15  ;;  %v1329_v26 = vmul.f32 -1.442695, %v2323_v33  ;;  %v1004_v51 = vand.u32 2147483648, %v2224_v48 }
 0x25d   : > { %v1096_v62 = vmul.f32 %v1051_v34, %v2139_v7  ;;  %1629 = vpow2.f32 %v1337_v29  ;;  %v1624_v42 = vpop.eup %1623  ;;  %v1111_v57 = vmul.f32 %v1095_v58, %v2028_v21  ;;  %v997_v53 = vadd.f32 %v2278_v39, %v996_v0 }
 0x25e   : > { %vm999_vm0 = vweird.f32 %v2278_v39  ;;  %v936_v30 = vmul.f32 %v2313_v23, %v935_v35  ;;  %v877_v32 = vadd.f32 %v2298_v6, %v876_v27  ;;  %vm879_vm1 = vweird.f32 %v2298_v6 }
 0x25f   : > { %v1112_v47 = vmul.f32 %v1096_v62, %v2019_v12  ;;  %v2337_v1 = vadd.f32 1.0, %v1624_v42  ;;  %v1626_v61 = vpop.eup %1625  ;;  %vm998_vm2 = vweird.f32 %v2224_v48  ;;  %vm2340_vm3 = vcmp.eq.f32.partialorder %v1002_v17, 8.507059e+37 }
 0x260   : > { %v884_v7 = vand.u32 2147483648, %v2274_v14  ;;  %1631 = vpow2.f32 %v1329_v26  ;;  %vm2345_vm4 = vmor %vm998_vm2, %vm999_vm0  ;;  %vm878_vm5 = vweird.f32 %v2274_v14  ;;  %v882_v43 = vand.u32 2147483647, %v2274_v14 }
 0x261   : > { %v1386_v12 = vpack.c.bf16 %v1112_v47, %v1111_v57  ;;  %1633 = vrcp.f32 %v2337_v1  ;;  %v1628_v48 = vpop.eup %1627  ;;  %v1001_v45 = vsel %vm2345_vm4, %v2278_v39, %v997_v53  ;;  %v1005_v54 = vor.u32 1.1754944e-38, %v1004_v51  ;;  %vm2357_vm6 = vmor %vm878_vm5, %vm879_vm1 }
 0x262   : > { %v937_v58 = vadd.f32 %v2313_v23, %v936_v30  ;;  %vm939_vm7 = vweird.f32 %v2313_v23  ;;  %v881_v14 = vsel %vm2357_vm6, %v2298_v6, %v877_v32  ;;  %v944_v38 = vand.u32 2147483648, %v2276_v2 }
 0x263   : > { %v1630_v44 = vpop.eup %1629  ;;  %1398 = vst [vmem:[%s1988_s30 + $0x30] sm:$0xff] %v1386_v12   ;;  %v2368_v39 = vadd.f32 1.0, %v1626_v61  ;;  %v2370_v28 = vadd.f32 1.0, %v1628_v48  ;;  %v885_v60 = vor.u32 1.1754944e-38, %v884_v7  ;;  %vm938_vm8 = vweird.f32 %v2276_v2 }
 0x264   : > { %v942_v3 = vand.u32 2147483647, %v2276_v2  ;;  %v2374_v8 = vadd.f32 1.0, %v1630_v44  ;;  %v1006_v5 = vsel %vm2340_vm3, %v1005_v54, %v1001_v45  ;;  %vm883_vm9 = vcmp.eq.f32.partialorder %v882_v43, 8.507059e+37  ;;  %vm2378_vm10 = vmor %vm938_vm8, %vm939_vm7 }
 0x265   : > { %1635 = vrcp.f32 %v2368_v39  ;;  %v886_v11 = vsel %vm883_vm9, %v885_v60, %v881_v14  ;;  %v941_v9 = vsel %vm2378_vm10, %v2313_v23, %v937_v58  ;;  %v1062_v2 = vand.u32 2147483647, %v2337_v1 }
 0x266   : > { %v1632_v6 = vpop.eup %1631  ;;  %1637 = vrcp.f32 %v2370_v28  ;;  %v945_v4 = vor.u32 1.1754944e-38, %v944_v38  ;;  %v1064_v59 = vand.u32 2147483648, %v2337_v1  ;;  %v2391_v16 = vmul.f32 %v1006_v5, %v2123_v52 }
 0x267   : > { %v1634_v63 = vpop.eup %1633  ;;  %1639 = vrcp.f32 %v2374_v8  ;;  %vm943_vm11 = vcmp.eq.f32.partialorder %v942_v3, 8.507059e+37  ;;  %v2395_v0 = vmul.f32 %v886_v11, %v2142_v10  ;;  %v897_v29 = vand.u32 2147483647, %v2368_v39 }
 0x268   : > { %v1054_v19 = vmul.f32 %v1634_v63, %v2337_v1  ;;  %v2397_v23 = vsel %vm943_vm11, %v945_v4, %v941_v9  ;;  %v2400_v15 = vadd.f32 1.0, %v1632_v6  ;;  %vm1058_vm12 = vweird.f32 %v2337_v1 }
 0x269   : > { %vm2403_vm13 = vcmp.eq.f32.partialorder %v1062_v2, 8.507059e+37  ;;  %v899_v52 = vand.u32 2147483648, %v2368_v39  ;;  %v1065_v34 = vor.u32 1.1754944e-38, %v1064_v59  ;;  %vm893_vm14 = vweird.f32 %v2368_v39 }
 0x26a   : > { %v1055_v27 = vsub.f32 1.0, %v1054_v19  ;;  %v1017_v10 = vand.u32 2147483647, %v2370_v28  ;;  %1641 = vrcp.f32 %v2400_v15  ;;  %vm1059_vm15 = vweird.f32 %v1634_v63 }
 0x26b   : > { %v1636_v17 = vpop.eup %1635  ;;  %vm1013_vm0 = vweird.f32 %v2370_v28  ;;  %vm2413_vm1 = vcmp.eq.f32.partialorder %v897_v29, 8.507059e+37  ;;  %v1019_v30 = vand.u32 2147483648, %v2370_v28  ;;  %vm1073_vm2 = vweird.f32 %v2374_v8  ;;  %vm1060_vm3 = vmor %vm1058_vm12, %vm1059_vm15 }
 0x26c   : > { %v1638_v26 = vpop.eup %1637  ;;  %v1056_v51 = vmul.f32 %v1634_v63, %v1055_v27  ;;  %v889_v62 = vmul.f32 %v1636_v17, %v2368_v39  ;;  %v900_v61 = vor.u32 1.1754944e-38, %v899_v52  ;;  %vm2423_vm4 = vcmp.eq.f32.partialorder %v1017_v10, 8.507059e+37 }
 0x26d   : > { %v1640_v42 = vpop.eup %1639  ;;  %v1009_v53 = vmul.f32 %v1638_v26, %v2370_v28  ;;  %v1077_v12 = vand.u32 2147483647, %v2374_v8  ;;  %v1079_v43 = vand.u32 2147483648, %v2374_v8  ;;  %vm894_vm5 = vweird.f32 %v1636_v17 }
 0x26e   : > { %v1057_v47 = vadd.f32 %v1634_v63, %v1056_v51  ;;  %v890_v32 = vsub.f32 1.0, %v889_v62  ;;  %v1069_v21 = vmul.f32 %v1640_v42, %v2374_v8  ;;  %vm1014_vm6 = vweird.f32 %v1638_v26  ;;  %vm895_vm8 = vmor %vm893_vm14, %vm894_vm5 }
 0x26f   : > { %v1010_v7 = vsub.f32 1.0, %v1009_v53  ;;  %v1020_v44 = vor.u32 1.1754944e-38, %v1019_v30  ;;  %vm1074_vm7 = vweird.f32 %v1640_v42  ;;  %vm2434_vm9 = vcmp.eq.f32.partialorder %v1077_v12, 8.507059e+37  ;;  %vm1015_vm10 = vmor %vm1013_vm0, %vm1014_vm6 }
 0x270   : > { %v1061_v48 = vsel %vm1060_vm3, %v1634_v63, %v1057_v47  ;;  %v891_v45 = vmul.f32 %v1636_v17, %v890_v32  ;;  %v1070_v54 = vsub.f32 1.0, %v1069_v21  ;;  %v1642_v24 = vpop.eup %1641  ;;  %v1080_v56 = vor.u32 1.1754944e-38, %v1079_v43  ;;  %vm1075_vm11 = vmor %vm1073_vm2, %vm1074_vm7 }
 0x271   : > { %v1011_v58 = vmul.f32 %v1638_v26, %v1010_v7  ;;  %v1066_v1 = vsel %vm2403_vm13, %v1065_v34, %v1061_v48  ;;  %v949_v60 = vmul.f32 %v1642_v24, %v2400_v15  ;;  %v957_v6 = vand.u32 2147483647, %v2400_v15 }
 0x272   : > { %v892_v14 = vadd.f32 %v1636_v17, %v891_v45  ;;  %v1071_v38 = vmul.f32 %v1640_v42, %v1070_v54  ;;  %v959_v63 = vand.u32 2147483648, %v2400_v15  ;;  %v1097_v4 = vmul.f32 %v1066_v1, %v2286_v18 }
 0x273   : > { %v1012_v3 = vadd.f32 %v1638_v26, %v1011_v58  ;;  %v950_v2 = vsub.f32 1.0, %v949_v60  ;;  %vm954_vm12 = vweird.f32 %v1642_v24  ;;  %v1109_v35 = vmul.f32 %v2391_v16, %v2034_v25 }
 0x274   : > { %v896_v11 = vsel %vm895_vm8, %v1636_v17, %v892_v14  ;;  %v1072_v9 = vadd.f32 %v1640_v42, %v1071_v38  ;;  %v1101_v18 = vmul.f32 %v2395_v0, %v2048_v41  ;;  %vm953_vm13 = vweird.f32 %v2400_v15 }
 0x275   : > { %v901_v39 = vsel %vm2413_vm1, %v900_v61, %v896_v11  ;;  %v1016_v59 = vsel %vm1015_vm10, %v1638_v26, %v1012_v3  ;;  %v951_v27 = vmul.f32 %v1642_v24, %v950_v2  ;;  %v1089_v25 = vmul.f32 %v2397_v23, %v2167_v37  ;;  %vm955_vm14 = vmor %vm953_vm13, %vm954_vm12 }
 0x276   : > { %v1086_v19 = vmul.f32 %v901_v39, %v2301_v13  ;;  %v1021_v28 = vsel %vm2423_vm4, %v1020_v44, %v1016_v59  ;;  %v1076_v29 = vsel %vm1075_vm11, %v1640_v42, %v1072_v9  ;;  %vm958_vm15 = vcmp.eq.f32.partialorder %v957_v6, 8.507059e+37 }
 0x277   : > { %v1094_v52 = vmul.f32 %v1021_v28, %v2304_v22  ;;  %v1081_v8 = vsel %vm2434_vm9, %v1080_v56, %v1076_v29  ;;  %v952_v34 = vadd.f32 %v1642_v24, %v951_v27  ;;  %v960_v22 = vor.u32 1.1754944e-38, %v959_v63 }
 0x278   : > { %v1102_v17 = vmul.f32 %v1086_v19, %v2053_v46  ;;  %v1098_v13 = vmul.f32 %v1081_v8, %v2307_v31  ;;  %v1113_v16 = vmul.f32 %v1097_v4, %v2046_v40 }
 0x279   : > { %v1110_v41 = vmul.f32 %v1094_v52, %v2055_v49  ;;  %v956_v0 = vsel %vm955_vm14, %v1642_v24, %v952_v34  ;;  %v1105_v49 = vmul.f32 %v1089_v25, %v2044_v36 }
 0x27a   : > { %v1361_v46 = vpack.c.bf16 %v1102_v17, %v1101_v18  ;;  %v1114_v31 = vmul.f32 %v1098_v13, %v2057_v50  ;;  %v961_v26 = vsel %vm958_vm15, %v960_v22, %v956_v0 }
 0x27b   : > { %v1381_v10 = vpack.c.bf16 %v1110_v41, %v1109_v35  ;;  %v1090_v37 = vmul.f32 %v961_v26, %v2323_v33 }
 0x27c   : > { %1393 = vst [vmem:[%s1988_s30 + $0x8] sm:$0xff] %v1361_v46   ;;  %v1391_v15 = vpack.c.bf16 %v1114_v31, %v1113_v16 }
 0x27d   : > { %1397 = vst [vmem:[%s1988_s30 + $0x28] sm:$0xff] %v1381_v10   ;;  %v1106_v23 = vmul.f32 %v1090_v37, %v2062_v55 }
 0x27e   : > { %1399 = vst [vmem:[%s1988_s30 + $0x38] sm:$0xff] %v1391_v15  }
 0x27f   : > { %v1371_v51 = vpack.c.bf16 %v1106_v23, %v1105_v49 }
 0x281   : > { %1395 = vst [vmem:[%s1988_s30 + $0x18] sm:$0xff] %v1371_v51  }
 0x282 PF: > { %s1352_s15 = sshll.u32 %s1775_s24, 6  ;;  %s1160_s21 = sshll.u32 %s1988_s30, 4  ;;  %s1161_s21 = int_to_ptr.vmem [resolvable:$true] %s1160_s21 }
 0x283   : > { %s1159_s29 = scalar_lea.hbm %s2530_s5, %s1352_s15  ;;  %s1148_s10 = scalar_lea.sflag [#allocation6], %s317_s2 }
 0x284   : > { %s1162_s13 = sshll.u32 %s1159_s29, 4  ;;  %s1693_s24 = scalar_lea.hbm %s2530_s5, 128  ;;  %s1163_s13 = int_to_ptr.hbm [resolvable:$true] %s1162_s13 }
 0x285   : > { %s1687_s28 = sshra.s32 %s1163_s13, 4  ;;  %s1688_s28 = int_to_ptr.hbm [resolvable:$true] %s1687_s28 }
 0x286   : > { %s1689_s8 = scalar_lea.hbm %s1688_s28, 64  ;;  %p1694_p1 = scmp.lt.s32.totalorder %s1688_s28, %s2530_s5 }
 0x287   : > { %p1690_p11 = scmp.ne.s32.totalorder %s1688_s28, %s1689_s8  ;;  %p1695_p2 = scmp.lt.s32.totalorder %s1693_s24, %s1689_s8 }
 0x289   : > { %p1691_p13 = pnand %p1690_p11, %p1897_p7  ;;  %p1696_p4 = por %p1695_p2, %p1694_p1 }
 0x28b   : > { %p1692_p0 = pneg %p1691_p13 }
 0x28d   : > { %p1697_p5 = pnand %p1696_p4, %p1692_p0 }
 0x28f   : > { %1700 = shalt.err (!%p1697_p5)
}
 0x290   : > { %s1793_s2 = smov 64   ;;  %s1794_s30 = smov 4  }
 0x291   : > { %1476 = dma.vmem_to_hbm [thread:$0]  (%p1897_p7), %s1161_s21, 1024, %s1163_s13, %s1148_s10, %s1793_s2, %s1793_s2, %s1794_s30  }
 0x292 PF: > { %p1488_p6 = scmp.ge.s32.totalorder %s1787_s27, 2  ;;  %s1177_s23 = sand.u32 1, %s1751_s18  }
 0x293   : > { %s1178_s9 = scalar_lea.sflag [#allocation6], %s1177_s23 }
 0x294   : > { %p1483_p3 = pnand %p1488_p6, %p1905_p12 }
 0x296   : > { %p1484_p8 = pneg %p1483_p3 }
 0x298   : > { %1746 = dma.done.wait (%p1484_p8), %s1178_s9, 1024  }
 0x299   : > { %1748 = vsyncadd (%p1484_p8), %s1178_s9, 4294966272  ;;  %s19_s27 = sadd.s32 1, %s1787_s27   ;;  %s2580_s15 = sld [smem:[#allocation10_spill]] }
 0x29a   : > { %p16_p9 = scmp.ge.s32.totalorder %s19_s27, 6   ;;  %s2581_s20 = sld [smem:[#allocation13_spill]] }
 0x29b   : > { %s2582_s11 = sld [smem:[#allocation14_spill]]  ;;  %s2585_s18 = smov %s1755_s19 }
 0x29c   : > { %s2583_s16 = sld [smem:[#allocation11_spill]]  ;;  %s2587_s21 = smov %s1767_s22 }
 0x29d   : > { %s2584_s29 = sld [smem:[#allocation12_spill]]  ;;  %s2589_s23 = smov %s1779_s25 }
 0x29e   : > { %s2590_s24 = smov %s1783_s26 }
 0x29f   : > { %s2586_s19 = smov %s2580_s15  ;;  %18 = sbr.rel (!%p16_p9) target bundleno = 9 (0x9), region = 139 }
 0x2a1   : > { %s2588_s22 = smov %s2582_s11 }
 0x2a2   : > { %s2591_s25 = smov %s2583_s16 }
 0x2a3   : > { %s2592_s26 = smov %s2584_s29 }
 0x2a4   :  { %1184 = vsyncpa [#allocation5], 1 }
 0x2a5   :  { %1186 = vsyncpa [#allocation5 + $0x1], 1 }
 0x2a6   :  { %1187 = vsyncpa [#allocation6], 1 }
 0x2a7   :  { %1189 = vsyncpa [#allocation6 + $0x1], 1 }

</bundles_post_ra>
